<compile_context>
chip_gen: v6e
topology: v6e:2x2x1
jax: 0.10.0
libtpu: 0.0.40
codegen_flags: <defaults>
</compile_context>

<pallas_src>
import functools

import jax
import jax.numpy as jnp
from jax import lax
from jax.experimental import pallas as pl
from jax.experimental.pallas import tpu as pltpu


# ----------------------------- Pallas kernels ------------------------------ #

def _conv_bnstats_kernel(p_ref, w_ref, y_ref, sum_ref, sq_ref, acc_ref):
    """Fused conv-as-matmul (K-tiled) + per-channel BN batch-stat accumulation.

    Grid: (p, i, k) = (parallel super-chunk, M tile, K tile).
    p_ref   : (tile_m, tile_k)  bf16 im2col patches
    w_ref   : (tile_k, Cpad)    bf16 reshaped weights
    y_ref   : (tile_m, Cpad)    bf16 pre-BN conv output (written on last k)
    sum_ref : (8, Cpad)         f32 partial sums for this super-chunk
    sq_ref  : (8, Cpad)         f32 partial sums of squares
    acc_ref : (tile_m, Cpad)    f32 matmul accumulator scratch
    """
    i = pl.program_id(1)
    k = pl.program_id(2)

    @pl.when(jnp.logical_and(i == 0, k == 0))
    def _():
        sum_ref[...] = jnp.zeros_like(sum_ref)
        sq_ref[...] = jnp.zeros_like(sq_ref)

    @pl.when(k == 0)
    def _():
        acc_ref[...] = jnp.zeros_like(acc_ref)

    acc_ref[...] += jnp.dot(p_ref[...], w_ref[...],
                            preferred_element_type=jnp.float32)

    @pl.when(k == pl.num_programs(2) - 1)
    def _():
        y = acc_ref[...]
        y_ref[...] = y.astype(y_ref.dtype)
        tm, cpad = y.shape
        # Partial reduce to (8, Cpad): pure VPU vreg adds over the sublane
        # groups; the final tiny cross-chunk reduce happens in JAX glue.
        y3 = y.reshape(tm // 8, 8, cpad)
        sum_ref[...] += jnp.sum(y3, axis=0)
        sq_ref[...] += jnp.sum(y3 * y3, axis=0)


def _bn_relu_kernel(y_ref, scale_ref, shift_ref, o_ref):
    # Fused BN-affine + ReLU epilogue.  f32 VPU math (v5e has no bf16 VALU).
    y = y_ref[...].astype(jnp.float32)
    o_ref[...] = jnp.maximum(y * scale_ref[...] + shift_ref[...], 0.0
                             ).astype(o_ref.dtype)


def _matmul_bias_kernel(p_ref, w_ref, b_ref, o_ref, acc_ref):
    """Plain conv-as-matmul (K-tiled) + bias add (prediction head Conv2d)."""
    k = pl.program_id(1)

    @pl.when(k == 0)
    def _():
        acc_ref[...] = jnp.zeros_like(acc_ref)

    acc_ref[...] += jnp.dot(p_ref[...], w_ref[...],
                            preferred_element_type=jnp.float32)

    @pl.when(k == pl.num_programs(1) - 1)
    def _():
        o_ref[...] = (acc_ref[...] + b_ref[...]).astype(o_ref.dtype)


# ------------------------------ small helpers ------------------------------ #

def _round_up(x, m):
    return (x + m - 1) // m * m


def _pick_m_tiling(M):
    """tile_m and number of parallel super-chunks (2 -> both v7x TCs busy)."""
    n_par = 2
    for tm in (512, 256, 128):
        if M >= n_par * tm:
            return tm, n_par
    return 128, 1


def _pick_k_tiling(K):
    """Single K block when it is small; otherwise stream 512-wide bf16 slabs."""
    if K <= 1024:
        return K, K                       # K_pad, tile_k (grid_k == 1)
    K_pad = _round_up(K, 512)
    return K_pad, 512


def _im2col_bf16(x_nchw, KH, KW, stride, padding, dilation):
    """NCHW f32 -> (N*Ho*Wo, KH*KW*Cin) bf16 patches (+ output spatial dims)."""
    N, Cin, H, W = x_nchw.shape
    Ho = (H + 2 * padding - dilation * (KH - 1) - 1) // stride + 1
    Wo = (W + 2 * padding - dilation * (KW - 1) - 1) // stride + 1
    x = jnp.transpose(x_nchw, (0, 2, 3, 1)).astype(jnp.bfloat16)   # NHWC
    xp = jnp.pad(x, ((0, 0), (padding, padding), (padding, padding), (0, 0)))
    cols = []
    for kh in range(KH):
        for kw in range(KW):
            h0, w0 = kh * dilation, kw * dilation
            cols.append(xp[:, h0:h0 + (Ho - 1) * stride + 1:stride,
                            w0:w0 + (Wo - 1) * stride + 1:stride, :])
    patches = jnp.concatenate(cols, axis=-1).reshape(N * Ho * Wo, KH * KW * Cin)
    return patches, Ho, Wo


def _weight_matrix(weight, K_pad, Cpad):
    """Torch (Cout, Cin, KH, KW) -> bf16 (K_pad, Cpad) matching im2col layout."""
    Cout, Cin, KH, KW = weight.shape
    w_mat = jnp.transpose(weight, (2, 3, 1, 0)).reshape(KH * KW * Cin, Cout)
    w_mat = jnp.pad(w_mat, ((0, K_pad - KH * KW * Cin), (0, Cpad - Cout)))
    return w_mat.astype(jnp.bfloat16)


# ------------------------------ BasicConv2d -------------------------------- #

@functools.partial(jax.jit, static_argnames=("stride", "padding", "dilation", "eps"))
def basic_conv2d(x_nchw, weight, gamma, beta, *, stride=1, padding=0,
                 dilation=1, eps=1e-5):
    """BasicConv2d forward (conv bias=False + BatchNorm2d training stats + ReLU)."""
    N, Cin, H, W = x_nchw.shape
    Cout, _, KH, KW = weight.shape

    patches, Ho, Wo = _im2col_bf16(x_nchw, KH, KW, stride, padding, dilation)
    M, K = patches.shape

    Cpad = _round_up(Cout, 128)                    # lane-dense output columns
    tile_m, n_par = _pick_m_tiling(M)
    grid_inner = pl.cdiv(M, n_par * tile_m)
    M_pad = n_par * tile_m * grid_inner
    K_pad, tile_k = _pick_k_tiling(K)
    grid_k = K_pad // tile_k

    if M_pad > M or K_pad > K:
        # Zero rows / zero K columns: no effect on stats (we divide by true M).
        patches = jnp.pad(patches, ((0, M_pad - M), (0, K_pad - K)))
    w_mat = _weight_matrix(weight, K_pad, Cpad)

    # VMEM budget from actual tile sizes (double buffers), clamped for v7x 64 MiB.
    vmem_est = (2 * tile_m * tile_k * 2 + 2 * tile_k * Cpad * 2
                + 2 * tile_m * Cpad * 2 + 4 * 8 * Cpad * 4
                + tile_m * Cpad * 4)
    vmem_limit = int(min(max(2 * vmem_est + (4 << 20), 16 << 20), 48 << 20))

    cost = pl.CostEstimate(
        flops=2 * M_pad * K_pad * Cpad,
        transcendentals=0,
        bytes_accessed=patches.size * 2 + w_mat.size * 2
        + M_pad * Cpad * 2 + 2 * n_par * 8 * Cpad * 4)

    # ---- 1) fused conv matmul + BN sum / sum-of-squares (single pass over y)
    y, psum, psq = pl.pallas_call(
        _conv_bnstats_kernel,
        out_shape=(jax.ShapeDtypeStruct((M_pad, Cpad), jnp.bfloat16),
                   jax.ShapeDtypeStruct((n_par * 8, Cpad), jnp.float32),
                   jax.ShapeDtypeStruct((n_par * 8, Cpad), jnp.float32)),
        grid=(n_par, grid_inner, grid_k),
        in_specs=[
            pl.BlockSpec((tile_m, tile_k), lambda p, i, k: (p * grid_inner + i, k)),
            pl.BlockSpec((tile_k, Cpad), lambda p, i, k: (k, 0)),
        ],
        out_specs=(
            pl.BlockSpec((tile_m, Cpad), lambda p, i, k: (p * grid_inner + i, 0)),
            pl.BlockSpec((8, Cpad), lambda p, i, k: (p, 0)),
            pl.BlockSpec((8, Cpad), lambda p, i, k: (p, 0)),
        ),
        scratch_shapes=[pltpu.VMEM((tile_m, Cpad), jnp.float32)],
        compiler_params=pltpu.CompilerParams(
            dimension_semantics=("parallel", "arbitrary", "arbitrary"),
            vmem_limit_bytes=vmem_limit),
        cost_estimate=cost,
    )(patches, w_mat)

    # ---- 2) tiny glue: merge partial stats, build per-channel affine ----
    ssum = jnp.sum(psum, axis=0)                     # (Cpad,)
    ssq = jnp.sum(psq, axis=0)
    mean = ssum / M                                  # divide by TRUE M
    var = jnp.maximum(ssq / M - mean * mean, 0.0)    # biased var (torch training)

    gamma_p = jnp.pad(gamma.astype(jnp.float32), (0, Cpad - Cout),
                      constant_values=1.0)
    beta_p = jnp.pad(beta.astype(jnp.float32), (0, Cpad - Cout))
    inv_std = lax.rsqrt(var + eps)
    scale = (gamma_p * inv_std).reshape(1, Cpad)
    shift = (beta_p - mean * gamma_p * inv_std).reshape(1, Cpad)

    # ---- 3) fused BN affine + ReLU epilogue (lane-dense, second pass over y)
    grid_m = M_pad // tile_m
    out2d = pl.pallas_call(
        _bn_relu_kernel,
        out_shape=jax.ShapeDtypeStruct((M_pad, Cpad), jnp.float32),
        grid=(grid_m,),
        in_specs=[pl.BlockSpec((tile_m, Cpad), lambda i: (i, 0)),
                  pl.BlockSpec((1, Cpad), lambda i: (0, 0)),
                  pl.BlockSpec((1, Cpad), lambda i: (0, 0))],
        out_specs=pl.BlockSpec((tile_m, Cpad), lambda i: (i, 0)),
        compiler_params=pltpu.CompilerParams(
            dimension_semantics=("parallel",),
            vmem_limit_bytes=vmem_limit),
    )(y, scale, shift)

    out = out2d[:M, :Cout].reshape(N, Ho, Wo, Cout)
    # NCHW to match PyTorch semantics.
    return jnp.transpose(out, (0, 3, 1, 2))


# ----------------------- plain Conv2d (prediction head) -------------------- #

@functools.partial(jax.jit, static_argnames=("stride", "padding", "dilation"))
def conv2d(x_nchw, weight, bias=None, *, stride=1, padding=0, dilation=1):
    """Plain Conv2d (torch weight layout, optional bias), no BN / ReLU."""
    N, Cin, H, W = x_nchw.shape
    Cout, _, KH, KW = weight.shape

    patches, Ho, Wo = _im2col_bf16(x_nchw, KH, KW, stride, padding, dilation)
    M, K = patches.shape

    Cpad = _round_up(Cout, 128)
    tile_m, _ = _pick_m_tiling(M)
    grid_m = pl.cdiv(M, tile_m)
    M_pad = grid_m * tile_m
    K_pad, tile_k = _pick_k_tiling(K)
    grid_k = K_pad // tile_k

    if M_pad > M or K_pad > K:
        patches = jnp.pad(patches, ((0, M_pad - M), (0, K_pad - K)))
    w_mat = _weight_matrix(weight, K_pad, Cpad)
    if bias is None:
        bias = jnp.zeros((Cout,), jnp.float32)
    b_row = jnp.pad(bias.astype(jnp.float32), (0, Cpad - Cout)).reshape(1, Cpad)

    vmem_est = (2 * tile_m * tile_k * 2 + 2 * tile_k * Cpad * 2
                + 2 * tile_m * Cpad * 4 + 2 * Cpad * 4 + tile_m * Cpad * 4)
    vmem_limit = int(min(max(2 * vmem_est + (4 << 20), 16 << 20), 48 << 20))

    out2d = pl.pallas_call(
        _matmul_bias_kernel,
        out_shape=jax.ShapeDtypeStruct((M_pad, Cpad), jnp.float32),
        grid=(grid_m, grid_k),
        in_specs=[
            pl.BlockSpec((tile_m, tile_k), lambda i, k: (i, k)),
            pl.BlockSpec((tile_k, Cpad), lambda i, k: (k, 0)),
            pl.BlockSpec((1, Cpad), lambda i, k: (0, 0)),
        ],
        out_specs=pl.BlockSpec((tile_m, Cpad), lambda i, k: (i, 0)),
        scratch_shapes=[pltpu.VMEM((tile_m, Cpad), jnp.float32)],
        compiler_params=pltpu.CompilerParams(
            dimension_semantics=("parallel", "arbitrary"),
            vmem_limit_bytes=vmem_limit),
    )(patches, w_mat, b_row)

    out = out2d[:M, :Cout].reshape(N, Ho, Wo, Cout)
    return jnp.transpose(out, (0, 3, 1, 2))


# ------------------------- DeNet module compositions ----------------------- #

def reduction_block(x, w1, g1, b1, w2, g2, b2):
    """DeNet Reduction: BasicConv2d(in,out,1) -> BasicConv2d(out,out,3,pad=1)."""
    x = basic_conv2d(x, w1, g1, b1, stride=1, padding=0, dilation=1)
    x = basic_conv2d(x, w2, g2, b2, stride=1, padding=1, dilation=1)
    return x


def bilinear_resize_align_corners(x_nchw, out_hw):
    # TODO(synk): F.interpolate(mode='bilinear', align_corners=True) kept as two
    # small separable JAX matmuls (glue, negligible next to the Pallas convs).
    N, C, H, W = x_nchw.shape
    OH, OW = out_hw
    if (H, W) == (OH, OW):
        return x_nchw

    def interp_matrix(out_sz, in_sz):
        if out_sz == 1 or in_sz == 1:
            return jnp.zeros((out_sz, in_sz), jnp.float32).at[:, 0].set(1.0)
        pos = jnp.arange(out_sz, dtype=jnp.float32) * ((in_sz - 1) / (out_sz - 1))
        lo = jnp.clip(jnp.floor(pos).astype(jnp.int32), 0, in_sz - 2)
        frac = pos - lo.astype(jnp.float32)
        m = jnp.zeros((out_sz, in_sz), jnp.float32)
        m = m.at[jnp.arange(out_sz), lo].add(1.0 - frac)
        m = m.at[jnp.arange(out_sz), lo + 1].add(frac)
        return m

    mh = interp_matrix(OH, H)
    mw = interp_matrix(OW, W)
    y = jnp.einsum("oh,nchw->ncow", mh, x_nchw)
    return jnp.einsum("pw,ncow->ncop", mw, y)


def conv_upsample_block(x, target_hw, w, g, b):
    """DeNet conv_upsample: bilinear(align_corners) to target + BasicConv2d 3x3."""
    if x.shape[2:] != tuple(target_hw):
        x = bilinear_resize_align_corners(x, target_hw)
    return basic_conv2d(x, w, g, b, stride=1, padding=1, dilation=1)


def features_block(xs, params):
    """DeNet `features`: one 1x1 BasicConv2d per scale."""
    return tuple(basic_conv2d(x, w, g, b, stride=1, padding=0, dilation=1)
                 for x, (w, g, b) in zip(xs, params))


def prediction_head(x, w1, g1, b1, w2, bias2):
    """DeNet prediction[i]: BasicConv2d(c,c,3,pad=1) -> Conv2d(c,1,1) with bias."""
    x = basic_conv2d(x, w1, g1, b1, stride=1, padding=1, dilation=1)
    return conv2d(x, w2, bias2, stride=1, padding=0, dilation=1)


# ----------------------------- references (JAX) ----------------------------- #

def _reference_basic(x_nchw, weight, gamma, beta, *, stride, padding, dilation,
                     eps=1e-5):
    # Matches the kernel's bf16 MXU operands with f32 accumulation.
    y = lax.conv_general_dilated(
        x_nchw.astype(jnp.bfloat16), weight.astype(jnp.bfloat16),
        window_strides=(stride, stride),
        padding=[(padding, padding), (padding, padding)],
        rhs_dilation=(dilation, dilation),
        dimension_numbers=("NCHW", "OIHW", "NCHW"),
        preferred_element_type=jnp.float32)
    mean = jnp.mean(y, axis=(0, 2, 3), keepdims=True)
    var = jnp.mean((y - mean) ** 2, axis=(0, 2, 3), keepdims=True)  # biased
    yn = (y - mean) / jnp.sqrt(var + eps)
    yn = yn * gamma.reshape(1, -1, 1, 1) + beta.reshape(1, -1, 1, 1)
    return jnp.maximum(yn, 0.0)


def _reference_conv(x_nchw, weight, bias, *, stride, padding, dilation):
    y = lax.conv_general_dilated(
        x_nchw.astype(jnp.bfloat16), weight.astype(jnp.bfloat16),
        window_strides=(stride, stride),
        padding=[(padding, padding), (padding, padding)],
        rhs_dilation=(dilation, dilation),
        dimension_numbers=("NCHW", "OIHW", "NCHW"),
        preferred_element_type=jnp.float32)
    return y + bias.reshape(1, -1, 1, 1)


# --------------------------------- main ------------------------------------ #

if __name__ == "__main__":
    key = jax.random.PRNGKey(0)
    keys = jax.random.split(key, 12)

    # ---- BasicConv2d(in_planes=4, out_planes=8, kernel_size=3, padding=1) ----
    N, Cin, H, W = 2, 4, 16, 16
    Cout, KH, KW = 8, 3, 3
    x = jax.random.normal(keys[0], (N, Cin, H, W), dtype=jnp.float32)
    w = 0.01 * jax.random.normal(keys[1], (Cout, Cin, KH, KW), dtype=jnp.float32)
    gamma = jnp.ones((Cout,), jnp.float32)   # BatchNorm2d weight filled with 1
    beta = jnp.zeros((Cout,), jnp.float32)   # BatchNorm2d bias zeroed

    out = jax.block_until_ready(
        basic_conv2d(x, w, gamma, beta, stride=1, padding=1, dilation=1))
    ref = _reference_basic(x, w, gamma, beta, stride=1, padding=1, dilation=1)
    assert out.shape == (N, Cout, H, W)
    assert jnp.allclose(out, ref, rtol=3e-2, atol=5e-3), \
        f"BasicConv2d max abs err {jnp.max(jnp.abs(out - ref))}"

    # ---- Reduction(in_channel=4, out_channel=8) ----
    w_r1 = 0.01 * jax.random.normal(keys[2], (Cout, Cin, 1, 1), dtype=jnp.float32)
    w_r2 = 0.01 * jax.random.normal(keys[3], (Cout, Cout, 3, 3), dtype=jnp.float32)
    red = jax.block_until_ready(
        reduction_block(x, w_r1, gamma, beta, w_r2, gamma, beta))
    red_ref = _reference_basic(
        _reference_basic(x, w_r1, gamma, beta, stride=1, padding=0, dilation=1),
        w_r2, gamma, beta, stride=1, padding=1, dilation=1)
    assert red.shape == (N, Cout, H, W)
    assert jnp.allclose(red, red_ref, rtol=6e-2, atol=1.5e-2), \
        f"Reduction max abs err {jnp.max(jnp.abs(red - red_ref))}"

    # ---- conv_upsample(channel=8): bilinear align_corners + BasicConv2d 3x3 ----
    xs_small = jax.random.normal(keys[4], (N, Cout, 8, 8), dtype=jnp.float32)
    w_cu = 0.01 * jax.random.normal(keys[5], (Cout, Cout, 3, 3), dtype=jnp.float32)
    cu = jax.block_until_ready(conv_upsample_block(xs_small, (H, W), w_cu, gamma, beta))
    cu_ref = _reference_basic(bilinear_resize_align_corners(xs_small, (H, W)),
                              w_cu, gamma, beta, stride=1, padding=1, dilation=1)
    assert cu.shape == (N, Cout, H, W)
    assert jnp.allclose(cu, cu_ref, rtol=3e-2, atol=5e-3), \
        f"conv_upsample max abs err {jnp.max(jnp.abs(cu - cu_ref))}"

    # ---- features(channel=8): four 1x1 BasicConv2d ----
    fw = [0.01 * jax.random.normal(keys[6 + i], (Cout, Cout, 1, 1), dtype=jnp.float32)
          for i in range(4)]
    feats = features_block((out, out, red, cu),
                           [(fwi, gamma, beta) for fwi in fw])
    feats = jax.block_until_ready(feats)
    f0_ref = _reference_basic(out, fw[0], gamma, beta, stride=1, padding=0, dilation=1)
    assert all(f.shape == (N, Cout, H, W) for f in feats)
    assert jnp.allclose(feats[0], f0_ref, rtol=3e-2, atol=5e-3), \
        f"features max abs err {jnp.max(jnp.abs(feats[0] - f0_ref))}"

    # ---- prediction[i]: BasicConv2d(8,8,3,pad=1) -> Conv2d(8,1,1) with bias ----
    w_p1 = 0.01 * jax.random.normal(keys[10], (Cout, Cout, 3, 3), dtype=jnp.float32)
    w_p2 = 0.01 * jax.random.normal(keys[11], (1, Cout, 1, 1), dtype=jnp.float32)
    b_p2 = jnp.zeros((1,), jnp.float32)
    pred = jax.block_until_ready(prediction_head(red, w_p1, gamma, beta, w_p2, b_p2))
    pred_ref = _reference_conv(
        _reference_basic(red, w_p1, gamma, beta, stride=1, padding=1, dilation=1),
        w_p2, b_p2, stride=1, padding=0, dilation=1)
    assert pred.shape == (N, 1, H, W)
    assert jnp.allclose(pred, pred_ref, rtol=3e-2, atol=3e-3), \
        f"prediction max abs err {jnp.max(jnp.abs(pred - pred_ref))}"

    print("KERNEL_OK")
</pallas_src>

<mosaic_0001>
module attributes {stable_mosaic.version = 11 : i64} {
  func.func @_conv_bnstats_kernel(%arg0: i32, %arg1: i32, %arg2: i32, %arg3: memref<256x36xbf16, #tpu.memory_space<vmem>>, %arg4: memref<36x128xbf16, #tpu.memory_space<vmem>>, %arg5: memref<256x128xbf16, #tpu.memory_space<vmem>>, %arg6: memref<8x128xf32, #tpu.memory_space<vmem>>, %arg7: memref<8x128xf32, #tpu.memory_space<vmem>>, %arg8: memref<256x128xf32, #tpu.memory_space<vmem>>) attributes {dimension_semantics = [#tpu.dimension_semantics<parallel>, #tpu.dimension_semantics<arbitrary>, #tpu.dimension_semantics<arbitrary>], iteration_bounds = array<i64: 2, 1, 1>, scalar_prefetch = 0 : i64, scratch_operands = 1 : i64, tpu.core_type = #tpu.core_type<tc>, window_params = [{transform_indices = @transform_0, window_bounds = array<i64: 256, 36>}, {transform_indices = @transform_1, window_bounds = array<i64: 36, 128>}, {transform_indices = @transform_2, window_bounds = array<i64: 256, 128>}, {transform_indices = @transform_3, window_bounds = array<i64: 8, 128>}, {transform_indices = @transform_4, window_bounds = array<i64: 8, 128>}]} {
    %c0_i32 = arith.constant 0 : i32
    %0 = arith.cmpi eq, %arg1, %c0_i32 : i32
    %c0_i32_0 = arith.constant 0 : i32
    %1 = arith.cmpi eq, %arg2, %c0_i32_0 : i32
    %2 = arith.andi %0, %1 : i1
    %3 = arith.extui %2 : i1 to i32
    %c0_i32_1 = arith.constant 0 : i32
    %4 = arith.cmpi ne, %3, %c0_i32_1 : i32
    scf.if %4 {
      %cst_13 = arith.constant 0.000000e+00 : f32
      %17 = vector.broadcast %cst_13 : f32 to vector<8x128xf32>
      %c0_14 = arith.constant 0 : index
      %c0_15 = arith.constant 0 : index
      %18 = vector.load %arg6[%c0_14, %c0_15] : memref<8x128xf32, #tpu.memory_space<vmem>>, vector<8x128xf32>
      tpu.vector_store %arg6[%c0_14, %c0_15], %17 {strides = array<i32>} : memref<8x128xf32, #tpu.memory_space<vmem>>, vector<8x128xf32>,
      %cst_16 = arith.constant 0.000000e+00 : f32
      %19 = vector.broadcast %cst_16 : f32 to vector<8x128xf32>
      %c0_17 = arith.constant 0 : index
      %c0_18 = arith.constant 0 : index
      %20 = vector.load %arg7[%c0_17, %c0_18] : memref<8x128xf32, #tpu.memory_space<vmem>>, vector<8x128xf32>
      tpu.vector_store %arg7[%c0_17, %c0_18], %19 {strides = array<i32>} : memref<8x128xf32, #tpu.memory_space<vmem>>, vector<8x128xf32>,
    } else {
    }
    %c0_i32_2 = arith.constant 0 : i32
    %5 = arith.cmpi eq, %arg2, %c0_i32_2 : i32
    %6 = arith.extui %5 : i1 to i32
    %c0_i32_3 = arith.constant 0 : i32
    %7 = arith.cmpi ne, %6, %c0_i32_3 : i32
    scf.if %7 {
      %cst_13 = arith.constant 0.000000e+00 : f32
      %17 = vector.broadcast %cst_13 : f32 to vector<256x128xf32>
      %c0_14 = arith.constant 0 : index
      %c0_15 = arith.constant 0 : index
      %18 = vector.load %arg8[%c0_14, %c0_15] : memref<256x128xf32, #tpu.memory_space<vmem>>, vector<256x128xf32>
      tpu.vector_store %arg8[%c0_14, %c0_15], %17 {strides = array<i32>} : memref<256x128xf32, #tpu.memory_space<vmem>>, vector<256x128xf32>,
    } else {
    }
    %c0 = arith.constant 0 : index
    %c0_4 = arith.constant 0 : index
    %8 = vector.load %arg8[%c0, %c0_4] : memref<256x128xf32, #tpu.memory_space<vmem>>, vector<256x128xf32>
    %c0_5 = arith.constant 0 : index
    %c0_6 = arith.constant 0 : index
    %9 = vector.load %arg3[%c0_5, %c0_6] : memref<256x36xbf16, #tpu.memory_space<vmem>>, vector<256x36xbf16>
    %c0_7 = arith.constant 0 : index
    %c0_8 = arith.constant 0 : index
    %10 = vector.load %arg4[%c0_7, %c0_8] : memref<36x128xbf16, #tpu.memory_space<vmem>>, vector<36x128xbf16>
    %cst = arith.constant dense<0.000000e+00> : vector<256x128xf32>
    %11 = tpu.matmul %9, %10, %cst {dimension_numbers = #tpu.dot_dimension_numbers<[1], [0], [0], [1], [0, 0, 1, 1], [], []>} : vector<256x36xbf16>, vector<36x128xbf16>, vector<256x128xf32> -> vector<256x128xf32>
    %12 = arith.addf %8, %11 : vector<256x128xf32>
    %c0_9 = arith.constant 0 : index
    %c0_10 = arith.constant 0 : index
    %13 = vector.load %arg8[%c0_9, %c0_10] : memref<256x128xf32, #tpu.memory_space<vmem>>, vector<256x128xf32>
    tpu.vector_store %arg8[%c0_9, %c0_10], %12 {strides = array<i32>} : memref<256x128xf32, #tpu.memory_space<vmem>>, vector<256x128xf32>,
    %c0_i32_11 = arith.constant 0 : i32
    %14 = arith.cmpi eq, %arg2, %c0_i32_11 : i32
    %15 = arith.extui %14 : i1 to i32
    %c0_i32_12 = arith.constant 0 : i32
    %16 = arith.cmpi ne, %15, %c0_i32_12 : i32
    scf.if %16 {
      %c0_13 = arith.constant 0 : index
      %c0_14 = arith.constant 0 : index
      %17 = vector.load %arg8[%c0_13, %c0_14] : memref<256x128xf32, #tpu.memory_space<vmem>>, vector<256x128xf32>
      %18 = arith.truncf %17 : vector<256x128xf32> to vector<256x128xbf16>
      %c0_15 = arith.constant 0 : index
      %c0_16 = arith.constant 0 : index
      %19 = vector.load %arg5[%c0_15, %c0_16] : memref<256x128xbf16, #tpu.memory_space<vmem>>, vector<256x128xbf16>
      tpu.vector_store %arg5[%c0_15, %c0_16], %18 {strides = array<i32>} : memref<256x128xbf16, #tpu.memory_space<vmem>>, vector<256x128xbf16>,
      %20 = vector.shape_cast %17 : vector<256x128xf32> to vector<32x8x128xf32>
      %c0_17 = arith.constant 0 : index
      %c0_18 = arith.constant 0 : index
      %21 = vector.load %arg6[%c0_17, %c0_18] : memref<8x128xf32, #tpu.memory_space<vmem>>, vector<8x128xf32>
      %cst_19 = arith.constant dense<0.000000e+00> : vector<8x128xf32>
      %22 = vector.multi_reduction <add>, %20, %cst_19 [0] : vector<32x8x128xf32> to vector<8x128xf32>
      %23 = arith.addf %21, %22 : vector<8x128xf32>
      %c0_20 = arith.constant 0 : index
      %c0_21 = arith.constant 0 : index
      %24 = vector.load %arg6[%c0_20, %c0_21] : memref<8x128xf32, #tpu.memory_space<vmem>>, vector<8x128xf32>
      tpu.vector_store %arg6[%c0_20, %c0_21], %23 {strides = array<i32>} : memref<8x128xf32, #tpu.memory_space<vmem>>, vector<8x128xf32>,
      %c0_22 = arith.constant 0 : index
      %c0_23 = arith.constant 0 : index
      %25 = vector.load %arg7[%c0_22, %c0_23] : memref<8x128xf32, #tpu.memory_space<vmem>>, vector<8x128xf32>
      %26 = arith.mulf %20, %20 : vector<32x8x128xf32>
      %cst_24 = arith.constant dense<0.000000e+00> : vector<8x128xf32>
      %27 = vector.multi_reduction <add>, %26, %cst_24 [0] : vector<32x8x128xf32> to vector<8x128xf32>
      %28 = arith.addf %25, %27 : vector<8x128xf32>
      %c0_25 = arith.constant 0 : index
      %c0_26 = arith.constant 0 : index
      %29 = vector.load %arg7[%c0_25, %c0_26] : memref<8x128xf32, #tpu.memory_space<vmem>>, vector<8x128xf32>
      tpu.vector_store %arg7[%c0_25, %c0_26], %28 {strides = array<i32>} : memref<8x128xf32, #tpu.memory_space<vmem>>, vector<8x128xf32>,
    } else {
    }
    return
  }
  func.func @transform_0(%arg0: i32, %arg1: i32, %arg2: i32) -> (i32, i32) {
    %c1_i32 = arith.constant 1 : i32
    %0 = arith.muli %arg0, %c1_i32 : i32
    %1 = arith.addi %0, %arg1 : i32
    %c0_i32 = arith.constant 0 : i32
    return %1, %arg2 : i32, i32
  }
  func.func @transform_1(%arg0: i32, %arg1: i32, %arg2: i32) -> (i32, i32) {
    %c0_i32 = arith.constant 0 : i32
    %c0_i32_0 = arith.constant 0 : i32
    return %arg2, %c0_i32 : i32, i32
  }
  func.func @transform_2(%arg0: i32, %arg1: i32, %arg2: i32) -> (i32, i32) {
    %c1_i32 = arith.constant 1 : i32
    %0 = arith.muli %arg0, %c1_i32 : i32
    %1 = arith.addi %0, %arg1 : i32
    %c0_i32 = arith.constant 0 : i32
    %c0_i32_0 = arith.constant 0 : i32
    return %1, %c0_i32 : i32, i32
  }
  func.func @transform_3(%arg0: i32, %arg1: i32, %arg2: i32) -> (i32, i32) {
    %c0_i32 = arith.constant 0 : i32
    %c0_i32_0 = arith.constant 0 : i32
    return %arg0, %c0_i32 : i32, i32
  }
  func.func @transform_4(%arg0: i32, %arg1: i32, %arg2: i32) -> (i32, i32) {
    %c0_i32 = arith.constant 0 : i32
    %c0_i32_0 = arith.constant 0 : i32
    return %arg0, %c0_i32 : i32, i32
  }
}

module attributes {stable_mosaic.version = 11 : i64} {
  func.func @_bn_relu_kernel(%arg0: i32, %arg1: memref<256x128xbf16, #tpu.memory_space<vmem>>, %arg2: memref<1x128xf32, #tpu.memory_space<vmem>>, %arg3: memref<1x128xf32, #tpu.memory_space<vmem>>, %arg4: memref<256x128xf32, #tpu.memory_space<vmem>>) attributes {dimension_semantics = [#tpu.dimension_semantics<parallel>], iteration_bounds = array<i64: 2>, scalar_prefetch = 0 : i64, scratch_operands = 0 : i64, tpu.core_type = #tpu.core_type<tc>, window_params = [{transform_indices = @transform_0, window_bounds = array<i64: 256, 128>}, {pipeline_mode = #tpu.pipeline_mode<synchronous>, transform_indices = @transform_1, window_bounds = array<i64: 1, 128>}, {pipeline_mode = #tpu.pipeline_mode<synchronous>, transform_indices = @transform_2, window_bounds = array<i64: 1, 128>}, {transform_indices = @transform_3, window_bounds = array<i64: 256, 128>}]} {
    %c0 = arith.constant 0 : index
    %c0_0 = arith.constant 0 : index
    %0 = vector.load %arg1[%c0, %c0_0] : memref<256x128xbf16, #tpu.memory_space<vmem>>, vector<256x128xbf16>
    %1 = arith.extf %0 : vector<256x128xbf16> to vector<256x128xf32>
    %c0_1 = arith.constant 0 : index
    %c0_2 = arith.constant 0 : index
    %2 = vector.load %arg2[%c0_1, %c0_2] : memref<1x128xf32, #tpu.memory_space<vmem>>, vector<1x128xf32>
    %3 = vector.broadcast %2 : vector<1x128xf32> to vector<256x128xf32>
    %4 = arith.mulf %1, %3 : vector<256x128xf32>
    %c0_3 = arith.constant 0 : index
    %c0_4 = arith.constant 0 : index
    %5 = vector.load %arg3[%c0_3, %c0_4] : memref<1x128xf32, #tpu.memory_space<vmem>>, vector<1x128xf32>
    %6 = vector.broadcast %5 : vector<1x128xf32> to vector<256x128xf32>
    %7 = arith.addf %4, %6 : vector<256x128xf32>
    %cst = arith.constant 0.000000e+00 : f32
    %8 = vector.broadcast %cst : f32 to vector<256x128xf32>
    %9 = arith.maximumf %7, %8 : vector<256x128xf32>
    %c0_5 = arith.constant 0 : index
    %c0_6 = arith.constant 0 : index
    %10 = vector.load %arg4[%c0_5, %c0_6] : memref<256x128xf32, #tpu.memory_space<vmem>>, vector<256x128xf32>
    tpu.vector_store %arg4[%c0_5, %c0_6], %9 {strides = array<i32>} : memref<256x128xf32, #tpu.memory_space<vmem>>, vector<256x128xf32>,
    return
  }
  func.func @transform_0(%arg0: i32) -> (i32, i32) {
    %c0_i32 = arith.constant 0 : i32
    %c0_i32_0 = arith.constant 0 : i32
    return %arg0, %c0_i32 : i32, i32
  }
  func.func @transform_1(%arg0: i32) -> (i32, i32) {
    %c0_i32 = arith.constant 0 : i32
    %c0_i32_0 = arith.constant 0 : i32
    %c0_i32_1 = arith.constant 0 : i32
    return %c0_i32, %c0_i32_0 : i32, i32
  }
  func.func @transform_2(%arg0: i32) -> (i32, i32) {
    %c0_i32 = arith.constant 0 : i32
    %c0_i32_0 = arith.constant 0 : i32
    %c0_i32_1 = arith.constant 0 : i32
    return %c0_i32, %c0_i32_0 : i32, i32
  }
  func.func @transform_3(%arg0: i32) -> (i32, i32) {
    %c0_i32 = arith.constant 0 : i32
    %c0_i32_0 = arith.constant 0 : i32
    return %arg0, %c0_i32 : i32, i32
  }
}

</mosaic_0001>

<bundles_post_ra>
// kernel: basic_conv2d.3
= control target key start
LH: loop header
LB: loop body
LE: loop exit
PB: predicated region body
PF: predicated region fallthrough
CT: control target
= control target key end

     0   :  { %s564_s12 = smov 0   ;;  %s711_s0 = inlined_call_operand.vmem [shape: bf16[512,128], index: 0, kind: input, shape index: {}]   ;;  %s712_s1 = inlined_call_operand.vmem [shape: f32[1,128], index: 1, kind: input, shape index: {}]   ;;  %s713_s2 = inlined_call_operand.vmem [shape: f32[1,128], index: 2, kind: input, shape index: {}]   ;;  %s714_s3 = inlined_call_operand.vmem [shape: f32[512,128], index: 3, kind: output, shape index: {}]  }
   0x1 LB: > { %s436_s13 = sadd.s32 4294967295, %s542_s12   ;;  %p440_p0 = scmp.ge.s32.totalorder %s542_s12, 1  ;;  %s542_s12 = sphi %s564_s12, %s13_s12  }
   0x2   : > { %p138_p1 = scmp.lt.s32.totalorder %s542_s12, 3 }
   0x4   : > { %p139_p2 = pnand %p440_p0, %p138_p1 }
   0x5   : > { %s441_s14 = sshll.u32 (!%p139_p2), %s436_s13, 5 }
   0x6   : > { %142 = sbr.rel (%p139_p2) target bundleno = 51 (0x33), region = 32  ;;  %p163_p3 = scmp.lt.s32.totalorder (!%p139_p2), %s441_s14, 63 }
   0xb   : > { %s716_s14 = smov (!%p163_p3, %s441_s14), 63  ;;  %v583_v0 = vld [vmem:[%s712_s1] ss:$0 sm:$0xff] }
   0xc   : > { %s442_s15 = sshll.u32 %s716_s14, 2  ;;  %v592_v9 = vld [vmem:[%s713_s2] ss:$0 sm:$0xff]  ;;  %s444_s23 = sshll.u32 %s716_s14, 3 }
   0xd   : > { %s578_s18 = scalar_lea.vmem %s711_s0, %s442_s15  ;;  %s610_s26 = scalar_lea.vmem %s714_s3, %s444_s23 }
   0xe   : > { %v450_v1 = vld [vmem:[%s578_s18] sm:$0xff]   ;;  %v513_v2 = vld [vmem:[%s578_s18 + $0x8] sm:$0xff]   ;;  %v514_v3 = vld [vmem:[%s578_s18 + $0x10] sm:$0xff]  }
   0xf   : > { %v451_v4 = vunpack.c.l.bf16 %v450_v1  ;;  %v452_v5 = vunpack.c.h.bf16 %v450_v1  ;;  %v455_v6 = vunpack.c.l.bf16 %v513_v2  ;;  %v456_v7 = vunpack.c.h.bf16 %v513_v2  ;;  %v515_v8 = vld [vmem:[%s578_s18 + $0x18] sm:$0xff]   ;;  %v516_v30 = vld [vmem:[%s578_s18 + $0x20] sm:$0xff]   ;;  %v517_v31 = vld [vmem:[%s578_s18 + $0x28] sm:$0xff]  }
  0x10   : > { %v459_v10 = vunpack.c.l.bf16 %v514_v3  ;;  %v460_v11 = vunpack.c.h.bf16 %v514_v3  ;;  %v463_v12 = vunpack.c.l.bf16 %v515_v8  ;;  %v464_v13 = vunpack.c.h.bf16 %v515_v8  ;;  %v518_v36 = vld [vmem:[%s578_s18 + $0x30] sm:$0xff]   ;;  %v519_v37 = vld [vmem:[%s578_s18 + $0x38] sm:$0xff]   ;;  %v520_v3 = vld [vmem:[%s578_s18 + $0x40] sm:$0xff]  }
  0x11   : > { %v245_v14 = vmul.f32 %v451_v4, %v583_v0  ;;  %v246_v15 = vmul.f32 %v452_v5, %v583_v0  ;;  %v247_v16 = vmul.f32 %v455_v6, %v583_v0  ;;  %v248_v17 = vmul.f32 %v456_v7, %v583_v0  ;;  %v521_v4 = vld [vmem:[%s578_s18 + $0x48] sm:$0xff]  }
  0x12   : > { %v249_v18 = vmul.f32 %v459_v10, %v583_v0  ;;  %v250_v19 = vmul.f32 %v460_v11, %v583_v0  ;;  %v251_v20 = vmul.f32 %v463_v12, %v583_v0  ;;  %v252_v21 = vmul.f32 %v464_v13, %v583_v0  ;;  %v522_v10 = vld [vmem:[%s578_s18 + $0x50] sm:$0xff]   ;;  %v523_v11 = vld [vmem:[%s578_s18 + $0x58] sm:$0xff]  }
  0x13   : > { %v284_v22 = vadd.f32 %v592_v9, %v245_v14  ;;  %v285_v23 = vadd.f32 %v592_v9, %v246_v15  ;;  %v286_v24 = vadd.f32 %v592_v9, %v247_v16  ;;  %v287_v25 = vadd.f32 %v592_v9, %v248_v17 }
  0x14   : > { %v288_v26 = vadd.f32 %v592_v9, %v249_v18  ;;  %v289_v27 = vadd.f32 %v592_v9, %v250_v19  ;;  %v290_v28 = vadd.f32 %v592_v9, %v251_v20  ;;  %v291_v29 = vadd.f32 %v592_v9, %v252_v21 }
  0x15   : > { %v316_v32 = vmax.f32 %v284_v22, 0.0  ;;  %v317_v33 = vmax.f32 %v285_v23, 0.0  ;;  %v318_v34 = vmax.f32 %v286_v24, 0.0  ;;  %v319_v35 = vmax.f32 %v287_v25, 0.0 }
  0x16   : > { %v320_v38 = vmax.f32 %v288_v26, 0.0  ;;  %v321_v39 = vmax.f32 %v289_v27, 0.0  ;;  %v322_v40 = vmax.f32 %v290_v28, 0.0  ;;  %v323_v41 = vmax.f32 %v291_v29, 0.0 }
  0x17   : > { %348 = vst [vmem:[%s610_s26] sm:$0xff] %v316_v32  ;;  %349 = vst [vmem:[%s610_s26 + $0x8] sm:$0xff] %v317_v33  ;;  %v467_v42 = vunpack.c.l.bf16 %v516_v30  ;;  %v468_v43 = vunpack.c.h.bf16 %v516_v30  ;;  %v471_v44 = vunpack.c.l.bf16 %v517_v31  ;;  %v472_v45 = vunpack.c.h.bf16 %v517_v31 }
  0x18   : > { %350 = vst [vmem:[%s610_s26 + $0x10] sm:$0xff] %v318_v34  ;;  %351 = vst [vmem:[%s610_s26 + $0x18] sm:$0xff] %v319_v35  ;;  %v475_v46 = vunpack.c.l.bf16 %v518_v36  ;;  %v476_v47 = vunpack.c.h.bf16 %v518_v36  ;;  %v479_v48 = vunpack.c.l.bf16 %v519_v37  ;;  %v480_v49 = vunpack.c.h.bf16 %v519_v37 }
  0x19   : > { %352 = vst [vmem:[%s610_s26 + $0x20] sm:$0xff] %v320_v38  ;;  %353 = vst [vmem:[%s610_s26 + $0x28] sm:$0xff] %v321_v39  ;;  %v253_v50 = vmul.f32 %v467_v42, %v583_v0  ;;  %v254_v51 = vmul.f32 %v468_v43, %v583_v0  ;;  %v255_v52 = vmul.f32 %v471_v44, %v583_v0  ;;  %v483_v16 = vunpack.c.l.bf16 %v520_v3 }
  0x1a   : > { %354 = vst [vmem:[%s610_s26 + $0x30] sm:$0xff] %v322_v40  ;;  %355 = vst [vmem:[%s610_s26 + $0x38] sm:$0xff] %v323_v41  ;;  %v256_v53 = vmul.f32 %v472_v45, %v583_v0  ;;  %v257_v54 = vmul.f32 %v475_v46, %v583_v0  ;;  %v258_v55 = vmul.f32 %v476_v47, %v583_v0  ;;  %v484_v17 = vunpack.c.h.bf16 %v520_v3  ;;  %v524_v40 = vld [vmem:[%s578_s18 + $0x60] sm:$0xff]   ;;  %v525_v41 = vld [vmem:[%s578_s18 + $0x68] sm:$0xff]  }
  0x1b   : > { %v259_v56 = vmul.f32 %v479_v48, %v583_v0  ;;  %v260_v57 = vmul.f32 %v480_v49, %v583_v0  ;;  %v292_v58 = vadd.f32 %v592_v9, %v253_v50  ;;  %v293_v59 = vadd.f32 %v592_v9, %v254_v51  ;;  %v526_v46 = vld [vmem:[%s578_s18 + $0x70] sm:$0xff]   ;;  %v527_v47 = vld [vmem:[%s578_s18 + $0x78] sm:$0xff]  }
  0x1c   : > { %v294_v60 = vadd.f32 %v592_v9, %v255_v52  ;;  %v295_v61 = vadd.f32 %v592_v9, %v256_v53  ;;  %v296_v62 = vadd.f32 %v592_v9, %v257_v54  ;;  %v297_v63 = vadd.f32 %v592_v9, %v258_v55 }
  0x1d   : > { %v298_v1 = vadd.f32 %v592_v9, %v259_v56  ;;  %v299_v2 = vadd.f32 %v592_v9, %v260_v57  ;;  %v324_v5 = vmax.f32 %v292_v58, 0.0  ;;  %v325_v6 = vmax.f32 %v293_v59, 0.0 }
  0x1e   : > { %v326_v7 = vmax.f32 %v294_v60, 0.0  ;;  %v327_v8 = vmax.f32 %v295_v61, 0.0  ;;  %v328_v12 = vmax.f32 %v296_v62, 0.0  ;;  %v329_v13 = vmax.f32 %v297_v63, 0.0 }
  0x1f   : > { %v330_v14 = vmax.f32 %v298_v1, 0.0  ;;  %v331_v15 = vmax.f32 %v299_v2, 0.0  ;;  %356 = vst [vmem:[%s610_s26 + $0x40] sm:$0xff] %v324_v5  ;;  %357 = vst [vmem:[%s610_s26 + $0x48] sm:$0xff] %v325_v6  ;;  %v487_v18 = vunpack.c.l.bf16 %v521_v4  ;;  %v488_v19 = vunpack.c.h.bf16 %v521_v4 }
  0x20   : > { %358 = vst [vmem:[%s610_s26 + $0x50] sm:$0xff] %v326_v7  ;;  %359 = vst [vmem:[%s610_s26 + $0x58] sm:$0xff] %v327_v8  ;;  %v491_v20 = vunpack.c.l.bf16 %v522_v10  ;;  %v492_v21 = vunpack.c.h.bf16 %v522_v10  ;;  %v495_v22 = vunpack.c.l.bf16 %v523_v11  ;;  %v496_v23 = vunpack.c.h.bf16 %v523_v11 }
  0x21   : > { %360 = vst [vmem:[%s610_s26 + $0x60] sm:$0xff] %v328_v12  ;;  %361 = vst [vmem:[%s610_s26 + $0x68] sm:$0xff] %v329_v13  ;;  %v261_v24 = vmul.f32 %v483_v16, %v583_v0  ;;  %v262_v25 = vmul.f32 %v484_v17, %v583_v0  ;;  %v263_v26 = vmul.f32 %v487_v18, %v583_v0  ;;  %v499_v52 = vunpack.c.l.bf16 %v524_v40 }
  0x22   : > { %362 = vst [vmem:[%s610_s26 + $0x70] sm:$0xff] %v330_v14  ;;  %363 = vst [vmem:[%s610_s26 + $0x78] sm:$0xff] %v331_v15  ;;  %v264_v27 = vmul.f32 %v488_v19, %v583_v0  ;;  %v265_v28 = vmul.f32 %v491_v20, %v583_v0  ;;  %v266_v29 = vmul.f32 %v492_v21, %v583_v0  ;;  %v500_v53 = vunpack.c.h.bf16 %v524_v40 }
  0x23   : > { %v267_v30 = vmul.f32 %v495_v22, %v583_v0  ;;  %v268_v31 = vmul.f32 %v496_v23, %v583_v0  ;;  %v300_v32 = vadd.f32 %v592_v9, %v261_v24  ;;  %v301_v33 = vadd.f32 %v592_v9, %v262_v25 }
  0x24   : > { %v302_v34 = vadd.f32 %v592_v9, %v263_v26  ;;  %v303_v35 = vadd.f32 %v592_v9, %v264_v27  ;;  %v304_v36 = vadd.f32 %v592_v9, %v265_v28  ;;  %v305_v37 = vadd.f32 %v592_v9, %v266_v29 }
  0x25   : > { %v306_v38 = vadd.f32 %v592_v9, %v267_v30  ;;  %v307_v39 = vadd.f32 %v592_v9, %v268_v31  ;;  %v332_v42 = vmax.f32 %v300_v32, 0.0  ;;  %v333_v43 = vmax.f32 %v301_v33, 0.0 }
  0x26   : > { %v334_v44 = vmax.f32 %v302_v34, 0.0  ;;  %v335_v45 = vmax.f32 %v303_v35, 0.0  ;;  %v336_v48 = vmax.f32 %v304_v36, 0.0  ;;  %v337_v49 = vmax.f32 %v305_v37, 0.0 }
  0x27   : > { %v338_v50 = vmax.f32 %v306_v38, 0.0  ;;  %v339_v51 = vmax.f32 %v307_v39, 0.0  ;;  %364 = vst [vmem:[%s610_s26 + $0x80] sm:$0xff] %v332_v42  ;;  %365 = vst [vmem:[%s610_s26 + $0x88] sm:$0xff] %v333_v43  ;;  %v503_v54 = vunpack.c.l.bf16 %v525_v41  ;;  %v504_v55 = vunpack.c.h.bf16 %v525_v41 }
  0x28   : > { %366 = vst [vmem:[%s610_s26 + $0x90] sm:$0xff] %v334_v44  ;;  %367 = vst [vmem:[%s610_s26 + $0x98] sm:$0xff] %v335_v45  ;;  %v507_v56 = vunpack.c.l.bf16 %v526_v46  ;;  %v508_v57 = vunpack.c.h.bf16 %v526_v46  ;;  %v511_v58 = vunpack.c.l.bf16 %v527_v47  ;;  %v512_v59 = vunpack.c.h.bf16 %v527_v47 }
  0x29   : > { %368 = vst [vmem:[%s610_s26 + $0xa0] sm:$0xff] %v336_v48  ;;  %369 = vst [vmem:[%s610_s26 + $0xa8] sm:$0xff] %v337_v49  ;;  %v269_v60 = vmul.f32 %v499_v52, %v583_v0  ;;  %v270_v61 = vmul.f32 %v500_v53, %v583_v0  ;;  %v271_v62 = vmul.f32 %v503_v54, %v583_v0 }
  0x2a   : > { %370 = vst [vmem:[%s610_s26 + $0xb0] sm:$0xff] %v338_v50  ;;  %371 = vst [vmem:[%s610_s26 + $0xb8] sm:$0xff] %v339_v51  ;;  %v272_v63 = vmul.f32 %v504_v55, %v583_v0  ;;  %v273_v1 = vmul.f32 %v507_v56, %v583_v0  ;;  %v274_v2 = vmul.f32 %v508_v57, %v583_v0 }
  0x2b   : > { %v275_v3 = vmul.f32 %v511_v58, %v583_v0  ;;  %v276_v4 = vmul.f32 %v512_v59, %v583_v0  ;;  %v308_v5 = vadd.f32 %v592_v9, %v269_v60  ;;  %v309_v6 = vadd.f32 %v592_v9, %v270_v61 }
  0x2c   : > { %v310_v7 = vadd.f32 %v592_v9, %v271_v62  ;;  %v311_v8 = vadd.f32 %v592_v9, %v272_v63  ;;  %v312_v10 = vadd.f32 %v592_v9, %v273_v1  ;;  %v313_v11 = vadd.f32 %v592_v9, %v274_v2 }
  0x2d   : > { %v314_v0 = vadd.f32 %v592_v9, %v275_v3  ;;  %v315_v12 = vadd.f32 %v592_v9, %v276_v4  ;;  %v340_v13 = vmax.f32 %v308_v5, 0.0  ;;  %v341_v14 = vmax.f32 %v309_v6, 0.0 }
  0x2e   : > { %v342_v15 = vmax.f32 %v310_v7, 0.0  ;;  %v343_v16 = vmax.f32 %v311_v8, 0.0  ;;  %v344_v17 = vmax.f32 %v312_v10, 0.0  ;;  %v345_v18 = vmax.f32 %v313_v11, 0.0 }
  0x2f   : > { %v346_v19 = vmax.f32 %v314_v0, 0.0  ;;  %v347_v20 = vmax.f32 %v315_v12, 0.0  ;;  %372 = vst [vmem:[%s610_s26 + $0xc0] sm:$0xff] %v340_v13  ;;  %373 = vst [vmem:[%s610_s26 + $0xc8] sm:$0xff] %v341_v14 }
  0x30   : > { %374 = vst [vmem:[%s610_s26 + $0xd0] sm:$0xff] %v342_v15  ;;  %375 = vst [vmem:[%s610_s26 + $0xd8] sm:$0xff] %v343_v16 }
  0x31   : > { %376 = vst [vmem:[%s610_s26 + $0xe0] sm:$0xff] %v344_v17  ;;  %377 = vst [vmem:[%s610_s26 + $0xe8] sm:$0xff] %v345_v18 }
  0x32   : > { %378 = vst [vmem:[%s610_s26 + $0xf0] sm:$0xff] %v346_v19  ;;  %379 = vst [vmem:[%s610_s26 + $0xf8] sm:$0xff] %v347_v20 }
  0x33 PF: > { %s13_s12 = sadd.s32 1, %s542_s12  }
  0x34   : > { %p10_p4 = scmp.ge.s32.totalorder %s13_s12, 4  }
  0x36   :  { %12 = sbr.rel (!%p10_p4) target bundleno = 1 (0x1), region = 62 }

// kernel: basic_conv2d.2
= control target key start
LH: loop header
LB: loop body
LE: loop exit
PB: predicated region body
PF: predicated region fallthrough
CT: control target
= control target key end

     0   :  { %s1584_s15 = smov 0   ;;  %s1586_s16 = smov 0   ;;  %s1768_s0 = inlined_call_operand.vmem [shape: bf16[512,36], index: 0, kind: input, shape index: {}]   ;;  %s1769_s1 = inlined_call_operand.vmem [shape: bf16[36,128], index: 1, kind: input, shape index: {}]   ;;  %s1770_s2 = inlined_call_operand.vmem [shape: bf16[512,128], index: 2, kind: output, shape index: {0}]   ;;  %s1771_s3 = inlined_call_operand.vmem [shape: f32[16,128], index: 3, kind: output, shape index: {1}]   ;;  %s1772_s4 = inlined_call_operand.vmem [shape: f32[16,128], index: 4, kind: output, shape index: {2}]  }
   0x1   :  { %s1588_s17 = smov 0  }
   0x2 LB: > { %s34_s18 = sadd.s32 1, %s1553_s16  ;;  %p1223_p0 = scmp.ge.s32.totalorder %s1557_s17, 1  ;;  %s1557_s17 = sphi %s1588_s17, %s15_s17   ;;  %s1553_s16 = sphi %s1586_s16, %s1774_s16   ;;  %s1549_s15 = sphi %s1584_s15, %s1773_s15  }
   0x3   : > { %p36_p1 = scmp.ge.s32.totalorder %s34_s18, 2  ;;  %p209_p2 = scmp.lt.s32.totalorder %s1557_s17, 3 }
   0x5   : > { %s1776_s18 = smov (%p36_p1, %s34_s18), 0  ;;  %p210_p3 = pnand %p1223_p0, %p209_p2 }
   0x6   : > { %s1224_s23 = sshll.u32 (!%p210_p3), %s1549_s15, 5  ;;  %p278_p5 = scmp.lt.s32.totalorder (!%p210_p3), %s1549_s15, 1 }
   0x7   : > { %213 = sbr.rel (%p210_p3) target bundleno = 289 (0x121), region = 28  ;;  %p255_p4 = scmp.lt.s32.totalorder (!%p210_p3), %s1224_s23, 63 }
   0xc   : > { %v1516_v0 = vld [vmem:[%s1769_s1 + $0x10] ss:$0 sps:$4 sm:$0x33]   ;;  %vm543_vm0 = vcmask 1041408   ;;  %v1517_v1 = vld [vmem:[%s1769_s1 + $0x8] sm:$0xff]   ;;  %v1518_v3 = vld [vmem:[%s1769_s1] sm:$0xff]  }
   0xd   : > { %1489 = vmatprep.subr.msk.bf16.mxu0 %vm543_vm0, %v1516_v0  ;;  %v545_v2 = vsel %vm543_vm0, %v1516_v0, 0  ;;  %1490 = vmatprep.subr.msk.bf16.mxu1 %vm543_vm0, %v1516_v0  ;;  %s1778_s23 = smov (!%p255_p4, %s1224_s23), 63  ;;  %vm494_vm1 = vcmask 293888   ;;  %s1780_s15 = smov (!%p278_p5, %s1549_s15), 1 }
   0xe   : > { %1446 = vmatpush3.bf16.msra.mxu0 %v545_v2  ;;  %1486 = vmatpush3.bf16.msra.mxu1 %v545_v2  ;;  %s1225_s26 = sshll.u32 %s1778_s23, 2  ;;  %s1228_s7 = sshll.u32 %s1780_s15, 3 }
   0xf   : > { %1447 = vmatprep.subr.bf16.mxu0 %v1517_v1  ;;  %1484 = vmatprep.subr.bf16.mxu1 %v1517_v1  ;;  %s1622_s29 = scalar_lea.vmem %s1768_s0, %s1225_s26  ;;  %s1661_s6 = scalar_lea.vmem %s1770_s2, %s1225_s26 }
  0x10   : > { %v1519_v4 = vld [vmem:[%s1622_s29] sm:$0xff]   ;;  %v1520_v5 = vld [vmem:[%s1622_s29 + $0x8] sm:$0xff]   ;;  %v1521_v6 = vld [vmem:[%s1622_s29 + $0x10] sm:$0xff]   ;;  %s281_s10 = scalar_lea.vmem %s1771_s3, %s1228_s7  ;;  %s285_s13 = scalar_lea.vmem %s1772_s4, %s1228_s7 }
  0x11   : > { %1451 = vmatprep.mubr.msk.bf16.mxu0 %vm494_vm1, %v1519_v4  ;;  %v1522_v7 = vld [vmem:[%s1622_s29 + $0x18] sm:$0xff]   ;;  %v1523_v8 = vld [vmem:[%s1622_s29 + $0x20] sm:$0xff]   ;;  %v1528_v10 = vld [vmem:[%s1622_s29 + $0x48] sm:$0xff]  }
  0x12   : > { %1448 = vmatpush3.bf16.msra.mxu0 %v1517_v1  ;;  %1487 = vmatpush3.bf16.msra.mxu1 %v1517_v1  ;;  %v1527_v9 = vld [vmem:[%s1622_s29 + $0x40] sm:$0xff]   ;;  %v1529_v11 = vld [vmem:[%s1622_s29 + $0x50] sm:$0xff]   ;;  %v1530_v12 = vld [vmem:[%s1622_s29 + $0x58] sm:$0xff]  }
  0x13   : > { %1449 = vmatprep.subr.bf16.mxu0 %v1518_v3  ;;  %1485 = vmatprep.subr.bf16.mxu1 %v1518_v3  ;;  %v1531_v13 = vld [vmem:[%s1622_s29 + $0x60] sm:$0xff]   ;;  %v1524_v14 = vld [vmem:[%s1622_s29 + $0x28] sm:$0xff]   ;;  %v1525_v15 = vld [vmem:[%s1622_s29 + $0x30] sm:$0xff]  }
  0x14   : > { %1467 = vmatprep.mubr.msk.bf16.mxu1 %vm494_vm1, %v1527_v9  ;;  %v1532_v16 = vld [vmem:[%s1622_s29 + $0x68] sm:$0xff]   ;;  %v1533_v17 = vld [vmem:[%s1622_s29 + $0x70] sm:$0xff]   ;;  %v1526_v18 = vld [vmem:[%s1622_s29 + $0x38] sm:$0xff]  }
  0x15   : > { %v1534_v19 = vld [vmem:[%s1622_s29 + $0x78] sm:$0xff]  }
  0x16   : > { %1450 = vmatpush3.bf16.msra.mxu0 %v1518_v3  ;;  %1488 = vmatpush3.bf16.msra.mxu1 %v1518_v3 }
  0x19   : > { %1452 = vmatmul.mubr.msk.bf16.vlgmr.msra.gmra.mxu0 %vm494_vm1, %v1520_v5  ;;  %1468 = vmatmul.mubr.msk.bf16.vlgmr.msra.gmra.mxu1 %vm494_vm1, %v1528_v10 }
  0x1a   : > { %1455 = vmatprep.mubr.msk.bf16.mxu0 %vm494_vm1, %v1521_v6  ;;  %1471 = vmatprep.mubr.msk.bf16.mxu1 %vm494_vm1, %v1529_v11 }
  0x21   : > { %1456 = vmatmul.mubr.msk.bf16.gmra.mxu0 %vm494_vm1, %v1522_v7  ;;  %1472 = vmatmul.mubr.msk.bf16.gmra.mxu1 %vm494_vm1, %v1530_v12 }
  0x22   : > { %1459 = vmatprep.mubr.msk.bf16.mxu0 %vm494_vm1, %v1523_v8  ;;  %1475 = vmatprep.mubr.msk.bf16.mxu1 %vm494_vm1, %v1531_v13 }
  0x29   : > { %1460 = vmatmul.mubr.msk.bf16.gmra.mxu0 %vm494_vm1, %v1524_v14  ;;  %1476 = vmatmul.mubr.msk.bf16.gmra.mxu1 %vm494_vm1, %v1532_v16 }
  0x2a   : > { %1463 = vmatprep.mubr.msk.bf16.mxu0 %vm494_vm1, %v1525_v15  ;;  %1479 = vmatprep.mubr.msk.bf16.mxu1 %vm494_vm1, %v1533_v17 }
  0x31   : > { %1464 = vmatmul.mubr.msk.bf16.gmra.mxu0 %vm494_vm1, %v1526_v18  ;;  %1480 = vmatmul.mubr.msk.bf16.gmra.mxu1 %vm494_vm1, %v1534_v19 }
  0xd9   : > { %v1453_v20 = vpop.f32.mrf.mxu0  ;;  %v1663_v25 = vpop.f32.mrf.mxu1 }
  0xda   : > { %v1004_v32 = vmul.f32 %v1453_v20, %v1453_v20 }
  0xdb   : > { %v581_v21 = vpop.f32.mrf.mxu0  ;;  %v1666_v31 = vpop.f32.mrf.mxu1 }
  0xdc   : > { %v1002_v26 = vmul.f32 %v581_v21, %v581_v21 }
  0xdd   : > { %v1454_v22 = vpop.f32.mrf.mxu0  ;;  %v1669_v36 = vpop.f32.mrf.mxu1 }
  0xde   : > { %v1339_v23 = vpack.c.bf16 %v1454_v22, %v1453_v20  ;;  %v1005_v37 = vmul.f32 %v1454_v22, %v1454_v22  ;;  %v1379_v40 = vpack.c.bf16 %v1669_v36, %v1663_v25 }
  0xdf   : > { %v584_v24 = vpop.f32.mrf.mxu0  ;;  %v1673_v42 = vpop.f32.mrf.mxu1 }
  0xe0   : > { %1411 = vst [vmem:[%s1661_s6 + $0x8] sm:$0xff] %v1339_v23   ;;  %v1334_v27 = vpack.c.bf16 %v584_v24, %v581_v21  ;;  %v968_v28 = vadd.f32 %v584_v24, %v581_v21  ;;  %v1003_v29 = vmul.f32 %v584_v24, %v584_v24  ;;  %1419 = vst [vmem:[%s1661_s6 + $0x48] sm:$0xff] %v1379_v40  }
  0xe1   : > { %v1457_v30 = vpop.f32.mrf.mxu0  ;;  %v1374_v48 = vpack.c.bf16 %v1673_v42, %v1666_v31  ;;  %v1678_v49 = vpop.f32.mrf.mxu1 }
  0xe2   : > { %1335 = vst [vmem:[%s1661_s6] sm:$0xff] %v1334_v27   ;;  %v969_v33 = vadd.f32 %v1453_v20, %v968_v28  ;;  %v1034_v34 = vadd.f32 %v1003_v29, %v1002_v26  ;;  %v1008_v56 = vmul.f32 %v1457_v30, %v1457_v30 }
  0xe3   : > { %v597_v35 = vpop.f32.mrf.mxu0  ;;  %1418 = vst [vmem:[%s1661_s6 + $0x40] sm:$0xff] %v1374_v48   ;;  %v1682_v55 = vpop.f32.mrf.mxu1 }
  0xe4   : > { %v1035_v38 = vadd.f32 %v1034_v34, %v1004_v32  ;;  %v970_v39 = vadd.f32 %v1454_v22, %v969_v33  ;;  %v1006_v44 = vmul.f32 %v597_v35, %v597_v35 }
  0xe5   : > { %v1458_v41 = vpop.f32.mrf.mxu0  ;;  %v1685_v60 = vpop.f32.mrf.mxu1 }
  0xe6   : > { %v971_v43 = vadd.f32 %v970_v39, %v597_v35  ;;  %v1036_v45 = vadd.f32 %v1035_v38, %v1005_v37  ;;  %v1349_v46 = vpack.c.bf16 %v1458_v41, %v1457_v30  ;;  %v1009_v61 = vmul.f32 %v1458_v41, %v1458_v41 }
  0xe7   : > { %v600_v47 = vpop.f32.mrf.mxu0  ;;  %v1389_v0 = vpack.c.bf16 %v1685_v60, %v1678_v49  ;;  %v1689_v2 = vpop.f32.mrf.mxu1 }
  0xe8   : > { %v1037_v50 = vadd.f32 %v1036_v45, %v1006_v44  ;;  %1413 = vst [vmem:[%s1661_s6 + $0x18] sm:$0xff] %v1349_v46   ;;  %v1344_v51 = vpack.c.bf16 %v600_v47, %v597_v35  ;;  %v972_v52 = vadd.f32 %v971_v43, %v600_v47  ;;  %v1007_v53 = vmul.f32 %v600_v47, %v600_v47 }
  0xe9   : > { %v1461_v54 = vpop.f32.mrf.mxu0  ;;  %1421 = vst [vmem:[%s1661_s6 + $0x58] sm:$0xff] %v1389_v0   ;;  %v1384_v8 = vpack.c.bf16 %v1689_v2, %v1682_v55  ;;  %v1694_v9 = vpop.f32.mrf.mxu1 }
  0xea   : > { %1412 = vst [vmem:[%s1661_s6 + $0x10] sm:$0xff] %v1344_v51   ;;  %v973_v57 = vadd.f32 %v1457_v30, %v972_v52  ;;  %v1038_v58 = vadd.f32 %v1037_v50, %v1007_v53  ;;  %v1012_v16 = vmul.f32 %v1461_v54, %v1461_v54  ;;  %v1018_v53 = vmul.f32 %v1666_v31, %v1666_v31 }
  0xeb   : > { %v613_v59 = vpop.f32.mrf.mxu0  ;;  %1420 = vst [vmem:[%s1661_s6 + $0x50] sm:$0xff] %v1384_v8   ;;  %v1698_v15 = vpop.f32.mrf.mxu1  ;;  %v1023_v8 = vmul.f32 %v1689_v2, %v1689_v2 }
  0xec   : > { %v1039_v62 = vadd.f32 %v1038_v58, %v1008_v56  ;;  %v974_v63 = vadd.f32 %v1458_v41, %v973_v57  ;;  %v1010_v4 = vmul.f32 %v613_v59, %v613_v59 }
  0xed   : > { %v1462_v1 = vpop.f32.mrf.mxu0  ;;  %v1701_v20 = vpop.f32.mrf.mxu1 }
  0xee   : > { %v975_v3 = vadd.f32 %v974_v63, %v613_v59  ;;  %v1040_v5 = vadd.f32 %v1039_v62, %v1009_v61  ;;  %v1359_v6 = vpack.c.bf16 %v1462_v1, %v1461_v54  ;;  %v1013_v21 = vmul.f32 %v1462_v1, %v1462_v1 }
  0xef   : > { %v616_v7 = vpop.f32.mrf.mxu0  ;;  %v1399_v24 = vpack.c.bf16 %v1701_v20, %v1694_v9  ;;  %v680_v27 = vpop.f32.mrf.mxu1  ;;  %v1020_v62 = vmul.f32 %v1663_v25, %v1663_v25 }
  0xf0   : > { %v1041_v10 = vadd.f32 %v1040_v5, %v1010_v4  ;;  %1415 = vst [vmem:[%s1661_s6 + $0x28] sm:$0xff] %v1359_v6   ;;  %v1354_v11 = vpack.c.bf16 %v616_v7, %v613_v59  ;;  %v976_v12 = vadd.f32 %v975_v3, %v616_v7  ;;  %v1011_v13 = vmul.f32 %v616_v7, %v616_v7 }
  0xf1   : > { %v1465_v14 = vpop.f32.mrf.mxu0  ;;  %1423 = vst [vmem:[%s1661_s6 + $0x68] sm:$0xff] %v1399_v24   ;;  %v1394_v34 = vpack.c.bf16 %v680_v27, %v1698_v15  ;;  %v1707_v35 = vpop.f32.mrf.mxu1  ;;  %v1019_v59 = vmul.f32 %v1673_v42, %v1673_v42  ;;  %v1022_v5 = vmul.f32 %v1682_v55, %v1682_v55 }
  0xf2   : > { %1414 = vst [vmem:[%s1661_s6 + $0x20] sm:$0xff] %v1354_v11   ;;  %v977_v17 = vadd.f32 %v1461_v54, %v976_v12  ;;  %v1042_v18 = vadd.f32 %v1041_v10, %v1011_v13  ;;  %v1016_v43 = vmul.f32 %v1465_v14, %v1465_v14 }
  0xf3   : > { %v629_v19 = vpop.f32.mrf.mxu0  ;;  %1422 = vst [vmem:[%s1661_s6 + $0x60] sm:$0xff] %v1394_v34   ;;  %v693_v41 = vpop.f32.mrf.mxu1 }
  0xf4   : > { %v1043_v22 = vadd.f32 %v1042_v18, %v1012_v16  ;;  %v978_v23 = vadd.f32 %v1462_v1, %v977_v17  ;;  %v1014_v29 = vmul.f32 %v629_v19, %v629_v19  ;;  %v1021_v1 = vmul.f32 %v1669_v36, %v1669_v36 }
  0xf5   : > { %v1466_v26 = vpop.f32.mrf.mxu0  ;;  %v1482_v46 = vpop.f32.mrf.mxu1  ;;  %v1027_v18 = vmul.f32 %v680_v27, %v680_v27 }
  0xf6   : > { %v979_v28 = vadd.f32 %v978_v23, %v629_v19  ;;  %v1044_v30 = vadd.f32 %v1043_v22, %v1013_v21  ;;  %v1369_v32 = vpack.c.bf16 %v1466_v26, %v1465_v14  ;;  %v1017_v47 = vmul.f32 %v1466_v26, %v1466_v26 }
  0xf7   : > { %v632_v33 = vpop.f32.mrf.mxu0  ;;  %v1409_v51 = vpack.c.bf16 %v1482_v46, %v1707_v35  ;;  %v696_v52 = vpop.f32.mrf.mxu1 }
  0xf8   : > { %v1045_v37 = vadd.f32 %v1044_v30, %v1014_v29  ;;  %1417 = vst [vmem:[%s1661_s6 + $0x38] sm:$0xff] %v1369_v32   ;;  %v1364_v38 = vpack.c.bf16 %v632_v33, %v629_v19  ;;  %v980_v39 = vadd.f32 %v979_v28, %v632_v33  ;;  %v1015_v40 = vmul.f32 %v632_v33, %v632_v33 }
  0xf9   : > { %1425 = vst [vmem:[%s1661_s6 + $0x78] sm:$0xff] %v1409_v51   ;;  %v1404_v57 = vpack.c.bf16 %v696_v52, %v693_v41  ;;  %v1032_v30 = vmul.f32 %v1707_v35, %v1707_v35  ;;  %v1033_v33 = vmul.f32 %v1482_v46, %v1482_v46 }
  0xfa   : > { %1416 = vst [vmem:[%s1661_s6 + $0x30] sm:$0xff] %v1364_v38   ;;  %v981_v44 = vadd.f32 %v1465_v14, %v980_v39  ;;  %v1046_v45 = vadd.f32 %v1045_v37, %v1015_v40  ;;  %v1026_v14 = vmul.f32 %v1698_v15, %v1698_v15 }
  0xfb   : > { %1424 = vst [vmem:[%s1661_s6 + $0x70] sm:$0xff] %v1404_v57  }
  0xfc   : > { %v982_v48 = vadd.f32 %v1466_v26, %v981_v44  ;;  %v1047_v50 = vadd.f32 %v1046_v45, %v1016_v43  ;;  %v1030_v26 = vmul.f32 %v693_v41, %v693_v41 }
  0xfe   : > { %v1048_v54 = vadd.f32 %v1047_v50, %v1017_v47  ;;  %v983_v56 = vadd.f32 %v982_v48, %v1666_v31 }
 0x100   : > { %v984_v58 = vadd.f32 %v983_v56, %v1673_v42  ;;  %v1049_v61 = vadd.f32 %v1048_v54, %v1018_v53 }
 0x102   : > { %v985_v63 = vadd.f32 %v1663_v25, %v984_v58  ;;  %v1050_v0 = vadd.f32 %v1049_v61, %v1019_v59  ;;  %v1024_v25 = vmul.f32 %v1678_v49, %v1678_v49 }
 0x104   : > { %v1051_v3 = vadd.f32 %v1050_v0, %v1020_v62  ;;  %v986_v31 = vadd.f32 %v1669_v36, %v985_v63  ;;  %v1025_v36 = vmul.f32 %v1685_v60, %v1685_v60 }
 0x106   : > { %v987_v4 = vadd.f32 %v986_v31, %v1682_v55  ;;  %v1052_v42 = vadd.f32 %v1051_v3, %v1021_v1 }
 0x108   : > { %v1053_v6 = vadd.f32 %v1052_v42, %v1022_v5  ;;  %v988_v7 = vadd.f32 %v987_v4, %v1689_v2 }
 0x10a   : > { %v989_v10 = vadd.f32 %v1678_v49, %v988_v7  ;;  %v1054_v11 = vadd.f32 %v1053_v6, %v1023_v8  ;;  %v1028_v49 = vmul.f32 %v1694_v9, %v1694_v9 }
 0x10c   : > { %v1055_v12 = vadd.f32 %v1054_v11, %v1024_v25  ;;  %v990_v55 = vadd.f32 %v1685_v60, %v989_v10  ;;  %v1029_v60 = vmul.f32 %v1701_v20, %v1701_v20 }
 0x10e   : > { %v991_v13 = vadd.f32 %v990_v55, %v1698_v15  ;;  %v1056_v2 = vadd.f32 %v1055_v12, %v1025_v36 }
 0x110   : > { %v1057_v16 = vadd.f32 %v1056_v2, %v1026_v14  ;;  %v992_v17 = vadd.f32 %v991_v13, %v680_v27  ;;  %v1031_v27 = vmul.f32 %v696_v52, %v696_v52 }
 0x112   : > { %v993_v19 = vadd.f32 %v1694_v9, %v992_v17  ;;  %v1058_v21 = vadd.f32 %v1057_v16, %v1027_v18 }
 0x114   : > { %v1059_v22 = vadd.f32 %v1058_v21, %v1028_v49  ;;  %v994_v23 = vadd.f32 %v1701_v20, %v993_v19 }
 0x116   : > { %v995_v24 = vadd.f32 %v994_v23, %v693_v41  ;;  %v1060_v15 = vadd.f32 %v1059_v22, %v1029_v60 }
 0x118   : > { %v1061_v28 = vadd.f32 %v1060_v15, %v1030_v26  ;;  %v996_v29 = vadd.f32 %v995_v24, %v696_v52 }
 0x11a   : > { %v997_v9 = vadd.f32 %v1707_v35, %v996_v29  ;;  %v1062_v32 = vadd.f32 %v1061_v28, %v1031_v27 }
 0x11c   : > { %v998_v34 = vadd.f32 %v1482_v46, %v997_v9  ;;  %v1063_v37 = vadd.f32 %v1062_v32, %v1032_v30 }
 0x11e   : > { %v1064_v20 = vadd.f32 %v1063_v37, %v1033_v33  ;;  %1000 = vst [vmem:[%s281_s10] sm:$0xff] %v998_v34 }
 0x120   : > { %1066 = vst [vmem:[%s285_s13] sm:$0xff] %v1064_v20 }
 0x121 PF: > { %s15_s17 = sadd.s32 1, %s1557_s17   ;;  %s1773_s15 = smov %s1553_s16 }
 0x122   : > { %p12_p6 = scmp.ge.s32.totalorder %s15_s17, 4   ;;  %s1774_s16 = smov %s1776_s18 }
 0x124   :  { %14 = sbr.rel (!%p12_p6) target bundleno = 2 (0x2), region = 97 }

</bundles_post_ra>
